<compile_context>
chip_gen: v7x
topology: tpu7x:2x2x1
jax: 0.10.0
libtpu: 0.0.40
codegen_flags: <defaults>
</compile_context>

<pallas_src>
import jax
import jax.numpy as jnp
from jax.experimental import pallas as pl
from jax.experimental.pallas import tpu as pltpu


def _h_sigmoid_kernel(x_ref, o_ref):
    x = x_ref[...]
    # relu6(x + 3) / 6  ==  clamp(x + 3, 0, 6) * (1/6)
    o_ref[...] = (jnp.clip(x + 3.0, 0.0, 6.0) * (1.0 / 6.0)).astype(o_ref.dtype)


def _round_up(a: int, b: int) -> int:
    return ((a + b - 1) // b) * b


def h_sigmoid(x: jax.Array) -> jax.Array:
    """Elementwise hard-sigmoid, same semantics as the PyTorch module."""
    orig_shape = x.shape
    orig_dtype = x.dtype

    LANE_W = 1024          # lane-dense trailing dim (multiple of 128)
    TILE_R_MAX = 512       # 512x1024 f32 block = 2 MiB per buffer

    total = int(x.size)
    itemsize = int(jnp.dtype(orig_dtype).itemsize)
    # Sublane packing: second-to-last block dim multiple of 8 (f32),
    # 16 (bf16/f16), 32 (int8/fp8).
    sublane = max(8, 32 // max(itemsize, 1))

    rows = max(1, -(-total // LANE_W))                    # ceil-div
    tile_r = min(TILE_R_MAX, _round_up(rows, sublane))    # multiple of sublane
    rows_padded = _round_up(rows, tile_r)
    padded_total = rows_padded * LANE_W

    xf = x.reshape(-1)
    if padded_total != total:
        xf = jnp.pad(xf, (0, padded_total - total))
    x2d = xf.reshape(rows_padded, LANE_W)

    grid = (rows_padded // tile_r,)

    out2d = pl.pallas_call(
        _h_sigmoid_kernel,
        out_shape=jax.ShapeDtypeStruct(x2d.shape, orig_dtype),
        grid_spec=pl.GridSpec(
            grid=grid,
            in_specs=[pl.BlockSpec((tile_r, LANE_W), lambda i: (i, 0),
                                   memory_space=pltpu.MemorySpace.VMEM)],
            out_specs=pl.BlockSpec((tile_r, LANE_W), lambda i: (i, 0),
                                   memory_space=pltpu.MemorySpace.VMEM),
        ),
        compiler_params=pltpu.CompilerParams(
            dimension_semantics=("parallel",),
        ),
    )(x2d)

    return out2d.reshape(-1)[:total].reshape(orig_shape)


if __name__ == "__main__":
    key = jax.random.PRNGKey(0)
    # NCHW, small shapes consistent with a conv-backbone activation.
    x = jax.random.normal(key, (2, 4, 16, 16), dtype=jnp.float32) * 4.0

    y = h_sigmoid(x)
    y = jax.block_until_ready(y)

    # Sanity check against pure-JAX reference.
    y_ref = jnp.clip(x + 3.0, 0.0, 6.0) / 6.0
    assert y.shape == x.shape and y.dtype == x.dtype
    assert jnp.allclose(y, y_ref, atol=1e-6), "mismatch vs reference"

    print("KERNEL_OK")
</pallas_src>

<mosaic_0001>
module attributes {stable_mosaic.version = 11 : i64} {
  func.func @_h_sigmoid_kernel(%arg0: i32, %arg1: memref<8x1024xf32, #tpu.memory_space<vmem>>, %arg2: memref<8x1024xf32, #tpu.memory_space<vmem>>) attributes {dimension_semantics = [#tpu.dimension_semantics<parallel>], iteration_bounds = array<i64: 1>, scalar_prefetch = 0 : i64, scratch_operands = 0 : i64, tpu.core_type = #tpu.core_type<tc>, window_params = [{transform_indices = @transform_0, window_bounds = array<i64: 8, 1024>}, {transform_indices = @transform_1, window_bounds = array<i64: 8, 1024>}]} {
    %c0 = arith.constant 0 : index
    %c0_0 = arith.constant 0 : index
    %0 = vector.load %arg1[%c0, %c0_0] : memref<8x1024xf32, #tpu.memory_space<vmem>>, vector<8x1024xf32>
    %cst = arith.constant 3.000000e+00 : f32
    %1 = vector.broadcast %cst : f32 to vector<8x1024xf32>
    %2 = arith.addf %0, %1 : vector<8x1024xf32>
    %cst_1 = arith.constant 0.000000e+00 : f32
    %cst_2 = arith.constant 6.000000e+00 : f32
    %3 = vector.broadcast %cst_1 : f32 to vector<8x1024xf32>
    %4 = arith.maximumf %3, %2 : vector<8x1024xf32>
    %5 = vector.broadcast %cst_2 : f32 to vector<8x1024xf32>
    %6 = arith.minimumf %5, %4 : vector<8x1024xf32>
    %cst_3 = arith.constant 0.166666672 : f32
    %7 = vector.broadcast %cst_3 : f32 to vector<8x1024xf32>
    %8 = arith.mulf %6, %7 : vector<8x1024xf32>
    %c0_4 = arith.constant 0 : index
    %c0_5 = arith.constant 0 : index
    %9 = vector.load %arg2[%c0_4, %c0_5] : memref<8x1024xf32, #tpu.memory_space<vmem>>, vector<8x1024xf32>
    tpu.vector_store %arg2[%c0_4, %c0_5], %8 {strides = array<i32>} : memref<8x1024xf32, #tpu.memory_space<vmem>>, vector<8x1024xf32>,
    return
  }
  func.func @transform_0(%arg0: i32) -> (i32, i32) {
    %c0_i32 = arith.constant 0 : i32
    %c0_i32_0 = arith.constant 0 : i32
    return %arg0, %c0_i32 : i32, i32
  }
  func.func @transform_1(%arg0: i32) -> (i32, i32) {
    %c0_i32 = arith.constant 0 : i32
    %c0_i32_0 = arith.constant 0 : i32
    return %arg0, %c0_i32 : i32, i32
  }
}

</mosaic_0001>

<bundles_post_ra>
// kernel: tpu_custom_call.1
= control target key start
LH: loop header
LB: loop body
LE: loop exit
PB: predicated region body
PF: predicated region fallthrough
CT: control target
= control target key end

     0   :  { %6 = vsyncpa [#allocation3], 0  ;;  %s170_s0 = inlined_call_operand.hbm [shape: f32[8,1024], index: 0, kind: input, shape index: {}]   ;;  %s171_s1 = inlined_call_operand.hbm [shape: f32[8,1024], index: 1, kind: output, shape index: {}]  }
   0x1   :  { %7 = vsyncpa [#allocation4], 0  ;;  %s134_s6 = smov [#allocation2]   ;;  %s86_s10 = scalar_lea.hbm %s170_s0, 1024 }
   0x2   :  { %s14_s7 = sshll.u32 %s134_s6, 4  ;;  %p87_p0 = scmp.ne.s32.totalorder %s170_s0, %s86_s10  ;;  %s15_s7 = int_to_ptr.vmem [resolvable:$true] %s14_s7 }
   0x3   :  { %p90_p1 = scmp.lt.u32.totalorder %s86_s10, %s170_s0 }
   0x5   :  { %p92_p2 = pnand %p90_p1, %p87_p0 }
   0x7   :  { %95 = shalt.err (!%p92_p2)
}
   0x8   :  { %s96_s15 = scalar_lea.vmem %s15_s7, 1024  ;;  %p101_p4 = scmp.lt.s32.totalorder %s15_s7, %s15_s7 }
   0x9   :  { %p97_p3 = scmp.ne.s32.totalorder %s15_s7, %s96_s15  ;;  %p102_p5 = scmp.lt.s32.totalorder %s96_s15, %s96_s15 }
   0xb   :  { %p103_p6 = por %p102_p5, %p101_p4 }
   0xd   :  { %p104_p7 = pnand %p103_p6, %p97_p3 }
   0xf   :  { %107 = shalt.err (!%p104_p7)
}
  0x10   :  { %17 = dma.hbm_to_vmem [thread:$0]  %s170_s0, 1024, %s15_s7, [#allocation3]  }
  0x11   :  { %130 = dma.done.wait [#allocation3], 1024  }
  0x12   :  { %131 = vsyncadd [#allocation3], 4294966272  ;;  %v21_v0 = vld [vmem:[#allocation2] sm:$0xff]  ;;  %v22_v1 = vld [vmem:[#allocation2 + $0x8] sm:$0xff]  ;;  %s135_s0 = smov [#allocation5]  }
  0x13   :  { %v23_v2 = vld [vmem:[#allocation2 + $0x10] sm:$0xff]  ;;  %v29_v3 = vadd.f32 3.0, %v21_v0  ;;  %v30_v4 = vadd.f32 3.0, %v22_v1  ;;  %v24_v6 = vld [vmem:[#allocation2 + $0x18] sm:$0xff]  ;;  %v25_v7 = vld [vmem:[#allocation2 + $0x20] sm:$0xff]  ;;  %s75_s18 = sshll.u32 %s135_s0, 4  ;;  %s76_s18 = int_to_ptr.vmem [resolvable:$true] %s75_s18 }
  0x14   :  { %v31_v5 = vadd.f32 3.0, %v23_v2  ;;  %v26_v8 = vld [vmem:[#allocation2 + $0x28] sm:$0xff]  ;;  %v32_v9 = vadd.f32 3.0, %v24_v6  ;;  %v33_v10 = vadd.f32 3.0, %v25_v7  ;;  %v27_v12 = vld [vmem:[#allocation2 + $0x30] sm:$0xff]  ;;  %v28_v13 = vld [vmem:[#allocation2 + $0x38] sm:$0xff]  ;;  %p113_p9 = scmp.lt.s32.totalorder %s76_s18, %s76_s18 }
  0x15   :  { %v34_v11 = vadd.f32 3.0, %v26_v8  ;;  %v37_v14 = vmax.f32 %v29_v3, 0.0  ;;  %v38_v15 = vmax.f32 %v30_v4, 0.0  ;;  %v35_v17 = vadd.f32 3.0, %v27_v12  ;;  %s108_s19 = scalar_lea.vmem %s76_s18, 1024 }
  0x16   :  { %v39_v16 = vmax.f32 %v31_v5, 0.0  ;;  %v40_v18 = vmax.f32 %v32_v9, 0.0  ;;  %v41_v19 = vmax.f32 %v33_v10, 0.0  ;;  %v36_v21 = vadd.f32 3.0, %v28_v13  ;;  %p109_p8 = scmp.ne.s32.totalorder %s76_s18, %s108_s19  ;;  %p114_p10 = scmp.lt.s32.totalorder %s108_s19, %s108_s19 }
  0x17   :  { %v42_v20 = vmax.f32 %v34_v11, 0.0  ;;  %v45_v22 = vmin.f32 %v37_v14, 6.0  ;;  %v46_v23 = vmin.f32 %v38_v15, 6.0  ;;  %v43_v25 = vmax.f32 %v35_v17, 0.0 }
  0x18   :  { %v47_v24 = vmin.f32 %v39_v16, 6.0  ;;  %v48_v26 = vmin.f32 %v40_v18, 6.0  ;;  %v49_v27 = vmin.f32 %v41_v19, 6.0  ;;  %v44_v29 = vmax.f32 %v36_v21, 0.0  ;;  %p115_p11 = por %p114_p10, %p113_p9 }
  0x19   :  { %v50_v28 = vmin.f32 %v42_v20, 6.0  ;;  %v53_v30 = vmul.f32 0.16666667, %v45_v22  ;;  %v54_v31 = vmul.f32 0.16666667, %v46_v23  ;;  %v51_v36 = vmin.f32 %v43_v25, 6.0 }
  0x1a   :  { %v55_v32 = vmul.f32 0.16666667, %v47_v24  ;;  %v56_v33 = vmul.f32 0.16666667, %v48_v26  ;;  %v57_v34 = vmul.f32 0.16666667, %v49_v27  ;;  %p116_p12 = pnand %p115_p11, %p109_p8 }
  0x1b   :  { %v58_v35 = vmul.f32 0.16666667, %v50_v28  ;;  %61 = vst [vmem:[#allocation5] sm:$0xff] %v53_v30  ;;  %62 = vst [vmem:[#allocation5 + $0x8] sm:$0xff] %v54_v31  ;;  %v52_v37 = vmin.f32 %v44_v29, 6.0 }
  0x1c   :  { %63 = vst [vmem:[#allocation5 + $0x10] sm:$0xff] %v55_v32  ;;  %64 = vst [vmem:[#allocation5 + $0x18] sm:$0xff] %v56_v33  ;;  %v59_v38 = vmul.f32 0.16666667, %v51_v36 }
  0x1d   :  { %65 = vst [vmem:[#allocation5 + $0x20] sm:$0xff] %v57_v34  ;;  %66 = vst [vmem:[#allocation5 + $0x28] sm:$0xff] %v58_v35  ;;  %v60_v39 = vmul.f32 0.16666667, %v52_v37 }
  0x1e   :  { %67 = vst [vmem:[#allocation5 + $0x30] sm:$0xff] %v59_v38 }
  0x1f   :  { %68 = vst [vmem:[#allocation5 + $0x38] sm:$0xff] %v60_v39 }
  0x20   :  { %119 = shalt.err (!%p116_p12)
}
  0x21   :  { %s120_s22 = scalar_lea.hbm %s171_s1, 1024 }
  0x22   :  { %p121_p13 = scmp.ne.s32.totalorder %s171_s1, %s120_s22  ;;  %p124_p0 = scmp.lt.u32.totalorder %s120_s22, %s171_s1 }
  0x24   :  { %p126_p1 = pnand %p124_p0, %p121_p13 }
  0x26   :  { %129 = shalt.err (!%p126_p1)
}
  0x27   :  { %78 = dma.vmem_to_hbm [thread:$0]  %s76_s18, 1024, %s171_s1, [#allocation4]  }
  0x28   :  { %132 = dma.done.wait [#allocation4], 1024  }
  0x29   :  { %133 = vsyncadd [#allocation4], 4294966272 }
  0x2a   :  { %82 = vsyncpa [#allocation3], 1 }
  0x2b   :  { %83 = vsyncpa [#allocation4], 1 }

</bundles_post_ra>
